<compile_context>
chip_gen: v5e
topology: v5e:2x2
jax: 0.10.0
libtpu: 0.0.40
codegen_flags: <defaults>
</compile_context>

<pallas_src>
import functools

import numpy as np
import jax
import jax.numpy as jnp
from jax.experimental import pallas as pl
from jax.experimental.pallas import tpu as pltpu


# ----------------------------------------------------------------------------
# The single fused Pallas kernel: conv(+folded branches) + bias + ReLU + maxpool
# ----------------------------------------------------------------------------
def fused_cnn_stack_kernel(x_ref, w_ref, b_ref, o_ref, *, batch, php):
    """x_ref: (batch*2*php, K*W*Cin)  im2col LHS, rows = ((b*2 + r)*php + ph)
    w_ref: (K*W*Cin, N)   stacked-Toeplitz folded weights, lanes = (q, pw_pad, cout)
    b_ref: (1, N)         folded bias tiled across (q, pw_pad)
    o_ref: (batch*php, N) pooled output, rows = (b*php + ph)
    """
    n = w_ref.shape[1]
    half = n // 2                       # lanes per pool-column-parity (q) block

    # One big MXU matmul: all batches, both pool-row parities, all K kernel rows.
    acc = jnp.dot(x_ref[...], w_ref[...], preferred_element_type=jnp.float32)

    # Max over pool-row parity r: 8-aligned sublane groups -> pure vreg vmax.
    parts = [
        jnp.maximum(acc[b * 2 * php:b * 2 * php + php, :],
                    acc[b * 2 * php + php:b * 2 * php + 2 * php, :])
        for b in range(batch)
    ]
    pooled_r = parts[0] if batch == 1 else jnp.concatenate(parts, axis=0)

    # Max over pool-col parity q: the two half-width lane blocks.  The roll (XLU)
    # keeps the operand full 128-lane so the final store stays unmasked.
    pooled = jnp.maximum(pooled_r, pltpu.roll(pooled_r, shift=half, axis=1))

    # Bias is per-channel and identical for all 4 pool corners; ReLU is monotone
    # -> bias-add + ReLU after the max == before it.  (Invariant breaks if any
    # per-position term is ever added before pooling.)
    o_ref[...] = jnp.maximum(pooled + b_ref[...], 0.0)


# ----------------------------------------------------------------------------
# Weight prep (host-side, ONCE per parameter set -- hoisted out of the forward)
# ----------------------------------------------------------------------------
def prepare_params(w_main, b_main, branch_ws, branch_bs, *, H, W):
    """Fold mean(1x1 branches)+residual into the main conv, Toeplitz-expand for the
    in-kernel single-matmul conv, and tile the bias.  Returns (rhs, bias_row)."""
    w_main = np.asarray(w_main, np.float32)
    b_main = np.asarray(b_main, np.float32)
    Cout, Cin, K, K2 = w_main.shape
    assert K == K2

    # ---- fold mean of the 1x1 branch convs + residual into the main weights ----
    if branch_ws:
        for bw in branch_ws:
            assert np.asarray(bw).shape == (Cout, Cout, 1, 1), (
                "branch folding assumes 1x1, stride-1, unpadded branch convs")
        mean_w = np.mean(np.stack([np.asarray(w, np.float32).reshape(Cout, Cout)
                                   for w in branch_ws]), axis=0)
        fmat = np.eye(Cout, dtype=np.float32) + mean_w.T
        b_extra = np.mean(np.stack([np.asarray(b, np.float32).reshape(-1)
                                    for b in branch_bs]), axis=0)
    else:
        fmat = np.eye(Cout, dtype=np.float32)
        b_extra = np.zeros((Cout,), np.float32)
    # w_fold[i, j, c, o] = sum_o' w_main[o', c, i, j] * fmat[o', o]
    w_fold = np.einsum("ocij,op->ijcp", w_main, fmat)
    b_fold = b_main @ fmat + b_extra                                   # (Cout,)

    # ---- stacked Toeplitz RHS: contraction (i, w, c) x lanes (q, pw_pad, o) ----
    OH, OW = H - K + 1, W - K + 1
    PW = OW // 2
    q_block = ((PW * Cout + 63) // 64) * 64            # pad each q block of lanes
    assert q_block % Cout == 0
    pwp = q_block // Cout                              # padded pooled width (8)
    rhs = np.zeros((K, W, Cin, 2, pwp, Cout), np.float32)
    for q in range(2):
        for j in range(K):
            for pw in range(PW):
                w = 2 * pw + q + j
                assert w < W        # always true for VALID conv at these shapes
                rhs[:, w, :, q, pw, :] += w_fold[:, j, :, :]
    rhs = rhs.reshape(K * W * Cin, 2 * pwp * Cout)     # (192, 128)

    bias_row = np.tile(b_fold.reshape(1, 1, Cout), (1, 2 * pwp, 1))
    bias_row = bias_row.reshape(1, 2 * pwp * Cout)     # (1, 128)
    return jnp.asarray(rhs), jnp.asarray(bias_row)


# ----------------------------------------------------------------------------
# Forward pass (equivalent of CNNStack.forward, output in NCHW)
# ----------------------------------------------------------------------------
@functools.partial(jax.jit, static_argnames=("cout",))
def cnn_stack_forward(data, rhs, bias_row, *, cout):
    x = jnp.squeeze(data, axis=-4)                     # (B, Cin, H, W)
    B, Cin, H, W = x.shape
    K = rhs.shape[0] // (W * Cin)
    OH, OW = H - K + 1, W - K + 1
    PH, PW = OH // 2, OW // 2
    PHp = ((PH + 7) // 8) * 8                          # pad pooled rows to 8-mult
    N = rhs.shape[1]

    # Trace-time constant gather indices: im2col row windows, 0-aligned per
    # (batch, pool-row-parity) group so every kernel load is a full 8-sublane vld.
    idx = np.empty((2 * PHp, K), np.int32)
    for r in range(2):
        for ph in range(PHp):
            for i in range(K):
                idx[r * PHp + ph, i] = min(2 * ph + r + i, H - 1)   # clamp pad rows
    idx = jnp.asarray(idx.reshape(-1))

    # Lane-pack (w, cin), gather the K row-windows -> im2col LHS (B*2*PHp, K*W*Cin).
    x_rows = x.transpose(0, 2, 3, 1).reshape(B, H, W * Cin).astype(jnp.float32)
    lhs = jnp.take(x_rows, idx, axis=1).reshape(B * 2 * PHp, K * W * Cin)

    kernel = functools.partial(fused_cnn_stack_kernel, batch=B, php=PHp)
    out = pl.pallas_call(
        kernel,
        out_shape=jax.ShapeDtypeStruct((B * PHp, N), jnp.float32),
        in_specs=[pl.BlockSpec(memory_space=pltpu.MemorySpace.VMEM)] * 3,
        out_specs=pl.BlockSpec(memory_space=pltpu.MemorySpace.VMEM),
    )(lhs, rhs, bias_row)

    # TODO(synk): the final un-interleave of the ~3 KB result (drop pad rows/lanes,
    # (B,PH,PW,C)->NCHW) stays in XLA; writing NCHW directly from the kernel would
    # force narrow masked stores, which is worse.
    y = out.reshape(B, PHp, N)[:, :PH, :PW * cout]
    return y.reshape(B, PH, PW, cout).transpose(0, 3, 1, 2)


# ----------------------------------------------------------------------------
# Pure-JAX reference (for correctness check)
# ----------------------------------------------------------------------------
def reference_forward(data, params):
    w_main, b_main, branch_ws, branch_bs = params
    x = jnp.squeeze(data, axis=-4)
    dn = ("NCHW", "OIHW", "NCHW")
    y = jax.lax.conv_general_dilated(x, w_main, (1, 1), "VALID", dimension_numbers=dn)
    y = y + b_main[None, :, None, None]
    if branch_ws:
        outs = []
        for bw, bb in zip(branch_ws, branch_bs):
            o = jax.lax.conv_general_dilated(y, bw, (1, 1), "VALID",
                                             dimension_numbers=dn)
            outs.append(o + bb[None, :, None, None])
        y = y + jnp.mean(jnp.stack(outs, axis=0), axis=0)
    y = jnp.maximum(y, 0.0)
    B, C, H, W = y.shape
    y = y[:, :, : H // 2 * 2, : W // 2 * 2]
    return y.reshape(B, C, H // 2, 2, W // 2, 2).max(axis=(3, 5))


# ----------------------------------------------------------------------------
# main
# ----------------------------------------------------------------------------
if __name__ == "__main__":
    key = jax.random.PRNGKey(0)
    k_in, k_wm, k_bm, k_w1, k_b1, k_w2, k_b2 = jax.random.split(key, 7)

    B, Cin, H, W = 2, 4, 16, 16
    Cout, K = 8, 3

    # input as the module expects (squeeze(-4) removes the singleton dim)
    data = jax.random.normal(k_in, (B, 1, Cin, H, W), dtype=jnp.float32)

    # deterministic synthetic parameters (shapes from nn.Conv2d specs)
    w_main = jax.random.normal(k_wm, (Cout, Cin, K, K), dtype=jnp.float32) * 0.1
    b_main = jax.random.normal(k_bm, (Cout,), dtype=jnp.float32) * 0.1
    branch_ws = [
        jax.random.normal(k_w1, (Cout, Cout, 1, 1), dtype=jnp.float32) * 0.1,
        jax.random.normal(k_w2, (Cout, Cout, 1, 1), dtype=jnp.float32) * 0.1,
    ]
    branch_bs = [
        jax.random.normal(k_b1, (Cout,), dtype=jnp.float32) * 0.1,
        jax.random.normal(k_b2, (Cout,), dtype=jnp.float32) * 0.1,
    ]
    params = (w_main, b_main, branch_ws, branch_bs)

    # Weight prep hoisted out of the per-call forward: done ONCE per parameter set.
    rhs, bias_row = prepare_params(w_main, b_main, branch_ws, branch_bs, H=H, W=W)

    out = jax.block_until_ready(cnn_stack_forward(data, rhs, bias_row, cout=Cout))
    ref = jax.block_until_ready(reference_forward(data, params))

    assert out.shape == (B, Cout, (H - K + 1) // 2, (W - K + 1) // 2), out.shape
    assert jnp.allclose(out, ref, atol=1e-3, rtol=1e-3), float(
        jnp.max(jnp.abs(out - ref)))
    print("KERNEL_OK")
</pallas_src>

<mosaic_0001>
module attributes {stable_mosaic.version = 11 : i64} {
  func.func @fused_cnn_stack_kernel(%arg0: memref<32x192xf32, #tpu.memory_space<vmem>>, %arg1: memref<192x128xf32, #tpu.memory_space<vmem>>, %arg2: memref<1x128xf32, #tpu.memory_space<vmem>>, %arg3: memref<16x128xf32, #tpu.memory_space<vmem>>) attributes {dimension_semantics = [], scalar_prefetch = 0 : i64, scratch_operands = 0 : i64, tpu.core_type = #tpu.core_type<tc>} {
    %c0 = arith.constant 0 : index
    %c0_0 = arith.constant 0 : index
    %0 = vector.load %arg0[%c0, %c0_0] : memref<32x192xf32, #tpu.memory_space<vmem>>, vector<32x192xf32>
    %c0_1 = arith.constant 0 : index
    %c0_2 = arith.constant 0 : index
    %1 = vector.load %arg1[%c0_1, %c0_2] : memref<192x128xf32, #tpu.memory_space<vmem>>, vector<192x128xf32>
    %cst = arith.constant dense<0.000000e+00> : vector<32x128xf32>
    %2 = tpu.matmul %0, %1, %cst {dimension_numbers = #tpu.dot_dimension_numbers<[1], [0], [0], [1], [0, 0, 1, 1], [], []>} : vector<32x192xf32>, vector<192x128xf32>, vector<32x128xf32> -> vector<32x128xf32>
    %3 = vector.extract_strided_slice %2 {offsets = [0, 0], sizes = [8, 128], strides = [1, 1]} : vector<32x128xf32> to vector<8x128xf32>
    %4 = vector.extract_strided_slice %2 {offsets = [8, 0], sizes = [8, 128], strides = [1, 1]} : vector<32x128xf32> to vector<8x128xf32>
    %5 = arith.maximumf %3, %4 : vector<8x128xf32>
    %6 = vector.extract_strided_slice %2 {offsets = [16, 0], sizes = [8, 128], strides = [1, 1]} : vector<32x128xf32> to vector<8x128xf32>
    %7 = vector.extract_strided_slice %2 {offsets = [24, 0], sizes = [8, 128], strides = [1, 1]} : vector<32x128xf32> to vector<8x128xf32>
    %8 = arith.maximumf %6, %7 : vector<8x128xf32>
    %9 = tpu.concatenate %5, %8 in 0 : vector<8x128xf32>, vector<8x128xf32> -> vector<16x128xf32>
    %c64_i32 = arith.constant 64 : i32
    %10 = tpu.dynamic_rotate %9 by %c64_i32 dim 1 : vector<16x128xf32>, i32 -> vector<16x128xf32>
    %11 = arith.maximumf %9, %10 : vector<16x128xf32>
    %c0_3 = arith.constant 0 : index
    %c0_4 = arith.constant 0 : index
    %12 = vector.load %arg2[%c0_3, %c0_4] : memref<1x128xf32, #tpu.memory_space<vmem>>, vector<1x128xf32>
    %13 = vector.broadcast %12 : vector<1x128xf32> to vector<16x128xf32>
    %14 = arith.addf %11, %13 : vector<16x128xf32>
    %cst_5 = arith.constant 0.000000e+00 : f32
    %15 = vector.broadcast %cst_5 : f32 to vector<16x128xf32>
    %16 = arith.maximumf %14, %15 : vector<16x128xf32>
    %c0_6 = arith.constant 0 : index
    %c0_7 = arith.constant 0 : index
    %17 = vector.load %arg3[%c0_6, %c0_7] : memref<16x128xf32, #tpu.memory_space<vmem>>, vector<16x128xf32>
    tpu.vector_store %arg3[%c0_6, %c0_7], %16 {strides = array<i32>} : memref<16x128xf32, #tpu.memory_space<vmem>>, vector<16x128xf32>,
    return
  }
}

</mosaic_0001>

<bundles_post_ra>
// kernel: cnn_stack_forward.1
= control target key start
LH: loop header
LB: loop body
LE: loop exit
PB: predicated region body
PF: predicated region fallthrough
CT: control target
= control target key end

     0   :  { %vm46_vm0 = vcmask 523264   ;;  %s177_s21 = smov 64   ;;  %s307_s1 = inlined_call_operand.vmem [shape: f32[192,128], index: 1, kind: input, shape index: {}]   ;;  %s308_s0 = inlined_call_operand.vmem [shape: f32[32,192], index: 0, kind: input, shape index: {}]   ;;  %s309_s2 = inlined_call_operand.vmem [shape: f32[1,128], index: 2, kind: input, shape index: {}]   ;;  %s310_s3 = inlined_call_operand.vmem [shape: f32[16,128], index: 3, kind: output, shape index: {}]  }
   0x1   :  { %v37_v0 = vld [vmem:[%s307_s1 + $0x78] sm:$0xff]  ;;  %v36_v1 = vld [vmem:[%s307_s1 + $0x70] sm:$0xff]  ;;  %v35_v3 = vld [vmem:[%s307_s1 + $0x68] sm:$0xff] }
   0x2   :  { %59 = vmatpush.msra.mxu0 %v37_v0  ;;  %143 = vmatpush.msra.mxu2 %v37_v0  ;;  %v45_v2 = vld [vmem:[%s307_s1 + $0xb8] sm:$0xff]  ;;  %v44_v4 = vld [vmem:[%s307_s1 + $0xb0] sm:$0xff]  ;;  %v43_v5 = vld [vmem:[%s307_s1 + $0xa8] sm:$0xff] }
   0x3   :  { %144 = vmatpush.msra.mxu3 %v37_v0  ;;  %96 = vmatpush.msra.mxu1 %v45_v2  ;;  %v34_v6 = vld [vmem:[%s307_s1 + $0x60] sm:$0xff]  ;;  %v33_v8 = vld [vmem:[%s307_s1 + $0x58] sm:$0xff]  ;;  %v32_v10 = vld [vmem:[%s307_s1 + $0x50] sm:$0xff] }
   0x4   :  { %60 = vmatpush.msra.mxu0 %v36_v1  ;;  %145 = vmatpush.msra.mxu2 %v36_v1  ;;  %v42_v7 = vld [vmem:[%s307_s1 + $0xa0] sm:$0xff]  ;;  %v41_v9 = vld [vmem:[%s307_s1 + $0x98] sm:$0xff]  ;;  %v40_v11 = vld [vmem:[%s307_s1 + $0x90] sm:$0xff] }
   0x5   :  { %146 = vmatpush.msra.mxu3 %v36_v1  ;;  %97 = vmatpush.msra.mxu1 %v44_v4  ;;  %v31_v12 = vld [vmem:[%s307_s1 + $0x48] sm:$0xff]  ;;  %v30_v14 = vld [vmem:[%s307_s1 + $0x40] sm:$0xff]  ;;  %v29_v16 = vld [vmem:[%s307_s1 + $0x38] sm:$0xff] }
   0x6   :  { %61 = vmatpush.msra.mxu0 %v35_v3  ;;  %147 = vmatpush.msra.mxu2 %v35_v3  ;;  %v39_v13 = vld [vmem:[%s307_s1 + $0x88] sm:$0xff]  ;;  %v38_v15 = vld [vmem:[%s307_s1 + $0x80] sm:$0xff]  ;;  %v28_v18 = vld [vmem:[%s307_s1 + $0x30] sm:$0xff] }
   0x7   :  { %148 = vmatpush.msra.mxu3 %v35_v3  ;;  %98 = vmatpush.msra.mxu1 %v43_v5  ;;  %v15_v17 = vld [vmem:[%s308_s0 + $0x8] sm:$0xff]  ;;  %v26_v20 = vld [vmem:[%s307_s1 + $0x20] sm:$0xff]  ;;  %v25_v21 = vld [vmem:[%s307_s1 + $0x18] sm:$0xff] }
   0x8   :  { %62 = vmatpush.msra.mxu0 %v34_v6  ;;  %149 = vmatpush.msra.mxu2 %v34_v6  ;;  %v27_v19 = vld [vmem:[%s307_s1 + $0x28] sm:$0xff]  ;;  %v17_v22 = vld [vmem:[%s308_s0 + $0x18] sm:$0xff]  ;;  %v24_v23 = vld [vmem:[%s307_s1 + $0x10] sm:$0xff] }
   0x9   :  { %150 = vmatpush.msra.mxu3 %v34_v6  ;;  %99 = vmatpush.msra.mxu1 %v42_v7  ;;  %v23_v24 = vld [vmem:[%s307_s1 + $0x8] sm:$0xff]  ;;  %v22_v25 = vld [vmem:[%s307_s1] sm:$0xff]  ;;  %v16_v27 = vld [vmem:[%s308_s0 + $0x10] sm:$0xff] }
   0xa   :  { %63 = vmatpush.msra.mxu0 %v33_v8  ;;  %151 = vmatpush.msra.mxu2 %v33_v8  ;;  %v14_v26 = vld [vmem:[%s308_s0] sm:$0xff]  ;;  %v19_v29 = vld [vmem:[%s308_s0 + $0x28] sm:$0xff]  ;;  %v20_v30 = vld [vmem:[%s308_s0 + $0x30] sm:$0xff] }
   0xb   :  { %152 = vmatpush.msra.mxu3 %v33_v8  ;;  %100 = vmatpush.msra.mxu1 %v41_v9  ;;  %v18_v28 = vld [vmem:[%s308_s0 + $0x20] sm:$0xff]  ;;  %v21_v31 = vld [vmem:[%s308_s0 + $0x38] sm:$0xff] }
   0xc   :  { %64 = vmatpush.msra.mxu0 %v32_v10  ;;  %153 = vmatpush.msra.mxu2 %v32_v10  ;;  %v176_v46 = vld [vmem:[%s309_s2] ss:$0 sm:$0xff] }
   0xd   :  { %154 = vmatpush.msra.mxu3 %v32_v10  ;;  %101 = vmatpush.msra.mxu1 %v40_v11 }
   0xe   :  { %65 = vmatpush.msra.mxu0 %v31_v12  ;;  %155 = vmatpush.msra.mxu2 %v31_v12 }
   0xf   :  { %156 = vmatpush.msra.mxu3 %v31_v12  ;;  %102 = vmatpush.msra.mxu1 %v39_v13 }
  0x10   :  { %66 = vmatpush.msra.mxu0 %v30_v14  ;;  %157 = vmatpush.msra.mxu2 %v30_v14 }
  0x11   :  { %158 = vmatpush.msra.mxu3 %v30_v14  ;;  %103 = vmatpush.msra.mxu1 %v38_v15 }
  0x12   :  { %67 = vmatpush.msra.mxu0 %v29_v16  ;;  %159 = vmatpush.msra.mxu2 %v29_v16 }
  0x13   :  { %160 = vmatpush.msra.mxu3 %v29_v16  ;;  %139 = vmatmul.msk.f32.vlgmr.msra.gmra.mxu1 %vm46_vm0, %v15_v17 }
  0x14   :  { %68 = vmatpush.msra.mxu0 %v28_v18  ;;  %161 = vmatpush.msra.mxu2 %v28_v18 }
  0x15   :  { %162 = vmatpush.msra.mxu3 %v28_v18 }
  0x16   :  { %69 = vmatpush.msra.mxu0 %v27_v19  ;;  %163 = vmatpush.msra.mxu2 %v27_v19 }
  0x17   :  { %164 = vmatpush.msra.mxu3 %v27_v19 }
  0x18   :  { %70 = vmatpush.msra.mxu0 %v26_v20  ;;  %165 = vmatpush.msra.mxu2 %v26_v20 }
  0x19   :  { %166 = vmatpush.msra.mxu3 %v26_v20 }
  0x1a   :  { %71 = vmatpush.msra.mxu0 %v25_v21  ;;  %167 = vmatpush.msra.mxu2 %v25_v21 }
  0x1b   :  { %168 = vmatpush.msra.mxu3 %v25_v21  ;;  %140 = vmatmul.msk.f32.gmra.mxu1 %vm46_vm0, %v17_v22 }
  0x1c   :  { %72 = vmatpush.msra.mxu0 %v24_v23  ;;  %169 = vmatpush.msra.mxu2 %v24_v23 }
  0x1d   :  { %170 = vmatpush.msra.mxu3 %v24_v23 }
  0x1e   :  { %73 = vmatpush.msra.mxu0 %v23_v24  ;;  %171 = vmatpush.msra.mxu2 %v23_v24 }
  0x1f   :  { %172 = vmatpush.msra.mxu3 %v23_v24 }
  0x20   :  { %74 = vmatpush.msra.mxu0 %v22_v25  ;;  %173 = vmatpush.msra.mxu2 %v22_v25 }
  0x21   :  { %174 = vmatpush.msra.mxu3 %v22_v25  ;;  %75 = vmatmul.f32.vlgmr.msra.gmra.mxu0 %v14_v26 }
  0x22   :  { %78 = vmatmul.f32.vlgmr.msra.gmra.mxu2 %v16_v27  ;;  %81 = vmatmul.f32.vlgmr.msra.gmra.mxu3 %v18_v28 }
  0x23   :  { %141 = vmatmul.msk.f32.gmra.mxu1 %vm46_vm0, %v19_v29 }
  0x2a   :  { %84 = vmatmul.f32.gmra.mxu3 %v20_v30 }
  0x2b   :  { %142 = vmatmul.msk.f32.gmra.mxu1 %vm46_vm0, %v21_v31 }
  0x90   :  { %v105_v32 = vpop.f32.mrf.mxu1 }
  0x98   :  { %v108_v33 = vpop.f32.mrf.mxu1 }
  0x9e   :  { %v76_v35 = vpop.f32.mrf.mxu0 }
  0x9f   :  { %v106_v38 = vadd.f32 %v105_v32, %v76_v35 }
  0xa0   :  { %v111_v34 = vpop.f32.mrf.mxu1 }
  0xa5   :  { %v79_v36 = vpop.f32.mrf.mxu2  ;;  %v82_v37 = vpop.f32.mrf.mxu3 }
  0xa6   :  { %v109_v39 = vadd.f32 %v108_v33, %v79_v36  ;;  %v112_v43 = vadd.f32 %v111_v34, %v82_v37 }
  0xa8   :  { %v117_v40 = vmax.f32 %v106_v38, %v109_v39  ;;  %v114_v41 = vpop.f32.mrf.mxu1 }
  0xaa   :  { %119 = vrot.lane.b32.xlu0 %v117_v40, %s177_s21 }
  0xad   :  { %v85_v42 = vpop.f32.mrf.mxu3 }
  0xae   :  { %v115_v44 = vadd.f32 %v114_v41, %v85_v42 }
  0xb0   :  { %v118_v45 = vmax.f32 %v112_v43, %v115_v44 }
  0xb2   :  { %121 = vrot.lane.b32.xlu0 %v118_v45, %s177_s21 }
 0x11c   :  { %v120_v47 = vpop.permute.xlu0 %119 }
 0x11d   :  { %v123_v48 = vmax.f32 %v117_v40, %v120_v47 }
 0x11f   :  { %v129_v49 = vadd.f32 %v176_v46, %v123_v48 }
 0x121   :  { %v131_v50 = vmax.f32 %v129_v49, 0.0 }
 0x123   :  { %133 = vst [vmem:[%s310_s3] sm:$0xff] %v131_v50 }
 0x124   :  { %v122_v51 = vpop.permute.xlu0 %121 }
 0x125   :  { %v124_v52 = vmax.f32 %v118_v45, %v122_v51 }
 0x127   :  { %v130_v53 = vadd.f32 %v176_v46, %v124_v52 }
 0x129   :  { %v132_v54 = vmax.f32 %v130_v53, 0.0 }
 0x12b   :  { %134 = vst [vmem:[%s310_s3 + $0x8] sm:$0xff] %v132_v54 }

</bundles_post_ra>
